<compile_context>
chip_gen: v5e
topology: v5e:2x2
jax: 0.10.0
libtpu: 0.0.40
codegen_flags: <defaults>
</compile_context>

<pallas_src>
import functools

import jax
import jax.numpy as jnp
from jax.experimental import pallas as pl
from jax.experimental.pallas import tpu as pltpu


def _round_up(x: int, m: int) -> int:
    return ((x + m - 1) // m) * m


def _self_output_kernel(x_ref, w_ref, b_ref, o_ref):
    # x_ref: (tm, H)   w_ref: (H, H)   b_ref: (1, H)   o_ref: (tm, H)
    acc = jnp.dot(x_ref[...], w_ref[...], preferred_element_type=jnp.float32)
    acc = acc + b_ref[...].astype(jnp.float32)
    o_ref[...] = acc.astype(o_ref.dtype)


def _self_output_residual_kernel(x_ref, res_ref, w_ref, b_ref, o_ref):
    # Same as above, plus the residual add (VPU slack under the MXU/DMA loop).
    acc = jnp.dot(x_ref[...], w_ref[...], preferred_element_type=jnp.float32)
    acc = acc + b_ref[...].astype(jnp.float32) + res_ref[...].astype(jnp.float32)
    o_ref[...] = acc.astype(o_ref.dtype)


def _vmem_capacity_bytes() -> int:
    try:
        return int(pltpu.get_tpu_info().vmem_capacity_bytes)
    except Exception:
        return 64 << 20  # conservative fallback (v7x-sized per-core VMEM)


@functools.partial(jax.jit, static_argnames=("tm", "out_dtype", "fuse_residual"))
def videomae_self_output(hidden_states, input_tensor, weight, bias, *,
                         tm=1024, out_dtype=None, fuse_residual=False):
    """hidden_states, input_tensor: (B, S, H); weight: (H, H) [in, out]; bias: (H,).

    out_dtype: optional output dtype (e.g. jnp.bfloat16) — defaults to the input
    dtype.  fuse_residual: opt-in in-kernel residual add (otherwise input_tensor
    is ignored, matching the reference forward).
    """
    B, S, H = hidden_states.shape
    M = B * S
    out_dt = jnp.dtype(out_dtype) if out_dtype is not None else hidden_states.dtype

    x2d = hidden_states.reshape(M, H)
    b2d = bias.reshape(1, H)

    in_b = x2d.dtype.itemsize
    w_b = weight.dtype.itemsize
    out_b = jnp.dtype(out_dt).itemsize
    res_b = input_tensor.dtype.itemsize if fuse_residual else 0

    # ---- generation-aware VMEM budget / row-tile selection ----------------
    vmem_cap = _vmem_capacity_bytes()
    # ~96 MiB scoped cap on 128-MiB parts (v5e/v6e), ~48 MiB on 64-MiB v7x.
    scoped_cap = min(vmem_cap - (16 << 20), int(0.75 * vmem_cap))
    budget = scoped_cap // 2  # keep per-step footprint well under the cap

    per_row = 2 * H * (in_b + out_b + res_b)                     # double-buffered x/out(/res)
    fixed = H * H * w_b + 2 * _round_up(H, 128) * b2d.dtype.itemsize  # Buffered(1) weight + bias
    avail = max(budget - fixed, 8 * per_row)
    tm_cap = max((avail // per_row) // 8 * 8, 8)

    tm_eff = max(8, min(tm, tm_cap, _round_up(M, 8)))
    tm_eff = (tm_eff // 8) * 8

    # Ragged last tile: OOB output rows are masked by Pallas; OOB input rows are
    # garbage but each output row depends only on its own input row.
    grid_m = pl.cdiv(M, tm_eff)
    # TODO(synk): on v7x, bias tm so grid_m splits evenly across the 2 TensorCores.

    vmem_est = per_row * tm_eff + fixed
    vmem_limit = int(min(scoped_cap, max(2 * vmem_est, 32 << 20)))

    cost = pl.CostEstimate(
        flops=2 * M * H * H,
        transcendentals=0,
        bytes_accessed=(M * H * (in_b + out_b + res_b)
                        + H * H * w_b + H * bias.dtype.itemsize),
    )

    x_spec = pl.BlockSpec((tm_eff, H), lambda i: (i, 0))
    # Resident weight/bias: constant index_map avoids re-DMA; Buffered(1) drops
    # the second (never used) VMEM buffer.
    w_spec = pl.BlockSpec((H, H), lambda i: (0, 0), pipeline_mode=pl.Buffered(1))
    b_spec = pl.BlockSpec((1, H), lambda i: (0, 0), pipeline_mode=pl.Buffered(1))
    o_spec = pl.BlockSpec((tm_eff, H), lambda i: (i, 0))

    if fuse_residual:
        kernel = _self_output_residual_kernel
        in_specs = [x_spec, pl.BlockSpec((tm_eff, H), lambda i: (i, 0)), w_spec, b_spec]
        operands = (x2d, input_tensor.reshape(M, H), weight, b2d)
    else:
        kernel = _self_output_kernel
        in_specs = [x_spec, w_spec, b_spec]
        operands = (x2d, weight, b2d)

    out2d = pl.pallas_call(
        kernel,
        out_shape=jax.ShapeDtypeStruct((M, H), out_dt),
        grid_spec=pltpu.PrefetchScalarGridSpec(
            num_scalar_prefetch=0,
            grid=(grid_m,),
            in_specs=in_specs,
            out_specs=o_spec,
        ),
        compiler_params=pltpu.CompilerParams(
            dimension_semantics=("parallel",),
            vmem_limit_bytes=vmem_limit,
        ),
        cost_estimate=cost,
    )(*operands)

    # TODO(synk): dropout is identity in eval mode; a training-mode kernel would
    # build the mask in-kernel with pltpu.prng_seed / pltpu.prng_random_bits.
    return out2d.reshape(B, S, H)


def _reference(hidden_states, weight, bias):
    return jnp.einsum("bsh,ho->bso", hidden_states, weight) + bias


if __name__ == "__main__":
    B, S, H = 2, 8, 32  # hidden_size = 32

    key = jax.random.PRNGKey(0)
    k_x, k_res, k_w, k_b = jax.random.split(key, 4)

    hidden_states = jax.random.normal(k_x, (B, S, H), dtype=jnp.float32)
    input_tensor = jax.random.normal(k_res, (B, S, H), dtype=jnp.float32)

    # Deterministic Linear init (PyTorch-style uniform in [-1/sqrt(H), 1/sqrt(H)]),
    # stored as (in, out) so the kernel computes x @ W + b.
    bound = 1.0 / (H ** 0.5)
    weight = jax.random.uniform(k_w, (H, H), jnp.float32, -bound, bound)
    bias = jax.random.uniform(k_b, (H,), jnp.float32, -bound, bound)

    ref = _reference(hidden_states, weight, bias)

    # f32 path (residual not fused: matches the reference forward exactly).
    out = jax.block_until_ready(
        videomae_self_output(hidden_states, input_tensor, weight, bias))
    assert out.shape == (B, S, H)
    assert jnp.allclose(out, ref, atol=1e-5, rtol=1e-5)

    # Ragged token count (M = 26, not a multiple of 8): no wrapper pad/slice;
    # the partial last tile is handled by masked OOB output writes.
    S2 = 13
    hs2 = jax.random.normal(k_x, (B, S2, H), dtype=jnp.float32)
    out2 = jax.block_until_ready(videomae_self_output(hs2, hs2, weight, bias))
    ref2 = _reference(hs2, weight, bias)
    assert out2.shape == (B, S2, H)
    assert jnp.allclose(out2, ref2, atol=1e-5, rtol=1e-5)

    # Opt-in fused residual (VideoMAELayer applies it downstream otherwise).
    out3 = jax.block_until_ready(videomae_self_output(
        hidden_states, input_tensor, weight, bias, fuse_residual=True))
    assert jnp.allclose(out3, ref + input_tensor, atol=1e-5, rtol=1e-5)

    # bf16 activations/weights supplied by the caller (no wrapper cast), bf16 out.
    hs_bf16 = hidden_states.astype(jnp.bfloat16)
    w_bf16 = weight.astype(jnp.bfloat16)
    out4 = jax.block_until_ready(videomae_self_output(
        hs_bf16, input_tensor, w_bf16, bias, out_dtype=jnp.bfloat16))
    ref4 = _reference(hs_bf16.astype(jnp.float32), w_bf16.astype(jnp.float32), bias)
    assert out4.dtype == jnp.bfloat16
    assert jnp.allclose(out4.astype(jnp.float32), ref4, atol=5e-2, rtol=5e-2)

    print("KERNEL_OK")
</pallas_src>

<mosaic_0001>
module attributes {stable_mosaic.version = 11 : i64} {
  func.func @_self_output_kernel(%arg0: i32, %arg1: memref<16x32xf32, #tpu.memory_space<vmem>>, %arg2: memref<32x32xf32, #tpu.memory_space<vmem>>, %arg3: memref<1x32xf32, #tpu.memory_space<vmem>>, %arg4: memref<16x32xf32, #tpu.memory_space<vmem>>) attributes {dimension_semantics = [#tpu.dimension_semantics<parallel>], iteration_bounds = array<i64: 1>, scalar_prefetch = 0 : i64, scratch_operands = 0 : i64, tpu.core_type = #tpu.core_type<tc>, window_params = [{transform_indices = @transform_0, window_bounds = array<i64: 16, 32>}, {pipeline_mode = #tpu.pipeline_mode<synchronous>, transform_indices = @transform_1, window_bounds = array<i64: 32, 32>}, {pipeline_mode = #tpu.pipeline_mode<synchronous>, transform_indices = @transform_2, window_bounds = array<i64: 1, 32>}, {transform_indices = @transform_3, window_bounds = array<i64: 16, 32>}]} {
    %c0 = arith.constant 0 : index
    %c0_0 = arith.constant 0 : index
    %0 = vector.load %arg1[%c0, %c0_0] : memref<16x32xf32, #tpu.memory_space<vmem>>, vector<16x32xf32>
    %c0_1 = arith.constant 0 : index
    %c0_2 = arith.constant 0 : index
    %1 = vector.load %arg2[%c0_1, %c0_2] : memref<32x32xf32, #tpu.memory_space<vmem>>, vector<32x32xf32>
    %cst = arith.constant dense<0.000000e+00> : vector<16x32xf32>
    %2 = tpu.matmul %0, %1, %cst {dimension_numbers = #tpu.dot_dimension_numbers<[1], [0], [0], [1], [0, 0, 1, 1], [], []>} : vector<16x32xf32>, vector<32x32xf32>, vector<16x32xf32> -> vector<16x32xf32>
    %c0_3 = arith.constant 0 : index
    %c0_4 = arith.constant 0 : index
    %3 = vector.load %arg3[%c0_3, %c0_4] : memref<1x32xf32, #tpu.memory_space<vmem>>, vector<1x32xf32>
    %4 = vector.broadcast %3 : vector<1x32xf32> to vector<16x32xf32>
    %5 = arith.addf %2, %4 : vector<16x32xf32>
    %c0_5 = arith.constant 0 : index
    %c0_6 = arith.constant 0 : index
    %6 = vector.load %arg4[%c0_5, %c0_6] : memref<16x32xf32, #tpu.memory_space<vmem>>, vector<16x32xf32>
    tpu.vector_store %arg4[%c0_5, %c0_6], %5 {strides = array<i32>} : memref<16x32xf32, #tpu.memory_space<vmem>>, vector<16x32xf32>,
    return
  }
  func.func @transform_0(%arg0: i32) -> (i32, i32) {
    %c0_i32 = arith.constant 0 : i32
    %c0_i32_0 = arith.constant 0 : i32
    return %arg0, %c0_i32 : i32, i32
  }
  func.func @transform_1(%arg0: i32) -> (i32, i32) {
    %c0_i32 = arith.constant 0 : i32
    %c0_i32_0 = arith.constant 0 : i32
    %c0_i32_1 = arith.constant 0 : i32
    return %c0_i32, %c0_i32_0 : i32, i32
  }
  func.func @transform_2(%arg0: i32) -> (i32, i32) {
    %c0_i32 = arith.constant 0 : i32
    %c0_i32_0 = arith.constant 0 : i32
    %c0_i32_1 = arith.constant 0 : i32
    return %c0_i32, %c0_i32_0 : i32, i32
  }
  func.func @transform_3(%arg0: i32) -> (i32, i32) {
    %c0_i32 = arith.constant 0 : i32
    %c0_i32_0 = arith.constant 0 : i32
    return %arg0, %c0_i32 : i32, i32
  }
}

</mosaic_0001>

<bundles_post_ra>
// kernel: videomae_self_output.1
= control target key start
LH: loop header
LB: loop body
LE: loop exit
PB: predicated region body
PF: predicated region fallthrough
CT: control target
= control target key end

     0   :  { %8 = vsyncpa [#allocation3], 0  ;;  %s249_s0 = inlined_call_operand.hbm [shape: f32[16,32], index: 0, kind: input, shape index: {}]   ;;  %s250_s1 = inlined_call_operand.hbm [shape: f32[32,32], index: 1, kind: input, shape index: {}]   ;;  %s251_s2 = inlined_call_operand.vmem [shape: f32[1,32], index: 2, kind: input, shape index: {}]   ;;  %s252_s3 = inlined_call_operand.hbm [shape: f32[16,32], index: 3, kind: output, shape index: {}]  }
   0x1   :  { %9 = vsyncpa [#allocation6], 0 }
   0x2   :  { %10 = vsyncpa [#allocation4], 0  ;;  %s15_s14 = sshll.u32 %s249_s0, 4  ;;  %s199_s15 = smov [#allocation2]   ;;  %s16_s14 = int_to_ptr.hbm [resolvable:$true] %s15_s14 }
   0x3   :  { %s17_s16 = sshll.u32 %s199_s15, 4  ;;  %s28_s19 = sshll.u32 %s250_s1, 4  ;;  %s18_s16 = int_to_ptr.vmem [resolvable:$true] %s17_s16  ;;  %s29_s19 = int_to_ptr.hbm [resolvable:$true] %s28_s19 }
   0x4   :  { %s200_s20 = smov 128   ;;  %s201_s21 = smov 8  }
   0x5   :  { %23 = dma.hbm_to_vmem [thread:$0]  %s16_s14, 256, %s18_s16, [#allocation3], %s200_s20, %s200_s20, %s201_s21  }
   0x6   :  { %s202_s22 = smov [#allocation5]  }
   0x7   :  { %s30_s23 = sshll.u32 %s202_s22, 4  ;;  %s31_s23 = int_to_ptr.vmem [resolvable:$true] %s30_s23 }
   0x8   :  { %36 = dma.hbm_to_vmem [thread:$0]  %s29_s19, 512, %s31_s23, [#allocation6], %s200_s20, %s200_s20, %s201_s21  }
   0x9   :  { %193 = dma.done.wait [#allocation3], 256  }
   0xa   :  { %194 = vsyncadd [#allocation3], 4294967040 }
   0xb   :  { %195 = dma.done.wait [#allocation6], 512  }
   0xc   :  { %196 = vsyncadd [#allocation6], 4294966784  ;;  %v52_v0 = vld [vmem:[#allocation5 + $0x18] sm:$0xff]  ;;  %v51_v1 = vld [vmem:[#allocation5 + $0x10] sm:$0xff]  ;;  %vm57_vm0 = vcmask 261120   ;;  %s203_s24 = smov [#allocation7]  }
   0xd   :  { %76 = vmatpush.msra.mxu0 %v52_v0  ;;  %111 = vmatpush.msra.mxu1 %v52_v0  ;;  %v50_v2 = vld [vmem:[#allocation5 + $0x8] sm:$0xff]  ;;  %v49_v3 = vld [vmem:[#allocation5] sm:$0xff]  ;;  %v47_v4 = vld [vmem:[#allocation2] sm:$0xff]  ;;  %s93_s25 = sshll.u32 %s203_s24, 4  ;;  %s95_s28 = sshll.u32 %s252_s3, 4  ;;  %s94_s25 = int_to_ptr.vmem [resolvable:$true] %s93_s25  ;;  %s96_s28 = int_to_ptr.hbm [resolvable:$true] %s95_s28 }
   0xe   :  { %v48_v5 = vld [vmem:[#allocation2 + $0x8] sm:$0xff]  ;;  %v120_v6 = vld [vmem:[%s251_s2] ss:$0 sm:$0xff] }
   0xf   :  { %77 = vmatpush.msra.mxu0 %v51_v1  ;;  %112 = vmatpush.msra.mxu1 %v51_v1 }
  0x11   :  { %78 = vmatpush.msra.mxu0 %v50_v2  ;;  %113 = vmatpush.msra.mxu1 %v50_v2 }
  0x13   :  { %79 = vmatpush.msra.mxu0 %v49_v3  ;;  %114 = vmatpush.msra.mxu1 %v49_v3 }
  0x14   :  { %109 = vmatmul.msk.f32.vlgmr.msra.gmra.mxu0 %vm57_vm0, %v47_v4  ;;  %110 = vmatmul.msk.f32.vlgmr.msra.gmra.mxu1 %vm57_vm0, %v48_v5 }
  0x91   :  { %v81_v7 = vpop.f32.mrf.mxu0  ;;  %v84_v8 = vpop.f32.mrf.mxu1 }
  0x92   :  { %v82_v9 = vadd.f32 %v120_v6, %v81_v7  ;;  %v85_v10 = vadd.f32 %v120_v6, %v84_v8 }
  0x94   :  { %87 = vst.msk [vmem:[#allocation7] sm:$0xff] %vm57_vm0, %v82_v9 }
  0x95   :  { %88 = vst.msk [vmem:[#allocation7 + $0x8] sm:$0xff] %vm57_vm0, %v85_v10 }
  0x96   :  { %101 = dma.vmem_to_hbm [thread:$0]  %s94_s25, 256, %s96_s28, [#allocation4], %s200_s20, %s200_s20, %s201_s21  }
  0x97   :  { %197 = dma.done.wait [#allocation4], 256  }
  0x98   :  { %198 = vsyncadd [#allocation4], 4294967040 }
  0x99   :  { %106 = vsyncpa [#allocation3], 1 }
  0x9a   :  { %107 = vsyncpa [#allocation6], 1 }
  0x9b   :  { %108 = vsyncpa [#allocation4], 1 }

</bundles_post_ra>
